<compile_context>
chip_gen: v7x
topology: tpu7x:2x2x1
jax: 0.10.0
libtpu: 0.0.40
codegen_flags: <defaults>
</compile_context>

<pallas_src>
import functools

import jax
import jax.numpy as jnp
from jax.experimental import pallas as pl
from jax.experimental.pallas import tpu as pltpu


# Offsets inside the flat packed parameter vector [w1 | b1 | w2 | b2].
_W1_OFF = 0                 # w1 (4, 6) row-major:  w1[k, j] -> _W1_OFF + k * 6 + j
_B1_OFF = _W1_OFF + 4 * 6   # b1 (6,)
_W2_OFF = _B1_OFF + 6       # w2 (6, 3) row-major:  w2[j, i] -> _W2_OFF + j * 3 + i
_B2_OFF = _W2_OFF + 6 * 3   # b2 (3,)
_N_PARAMS = _B2_OFF + 3     # 51 scalars total


def _round_up(n: int, m: int) -> int:
    return ((n + m - 1) // m) * m


def _cdiv(a: int, b: int) -> int:
    return (a + b - 1) // b


def _iris_kernel(params_ref, x_ref, o_ref, *, approx_sigmoid: bool):
    """One batch tile of the MLP, batch split across (sublane, lane) planes.

    params_ref: (51,) f32 in SMEM (resident across all grid steps)
    x_ref:      (4, R, C) in VMEM   (feature k -> full (R, C) plane)
    o_ref:      (3, R, C) in VMEM
    """
    cdt = x_ref.dtype

    def p(idx):  # one packed scalar, cast to the compute dtype
        return params_ref[idx].astype(cdt)

    # Interleaved accumulation keeps only (3 output accumulators + 1 hidden
    # plane) live instead of all 6 hidden planes -> less VMEM/vreg pressure.
    out = [None, None, None]
    for j in range(6):
        # Hidden pre-activation: b1[j] + sum_k w1[k, j] * x[k]  (VPU FMAs on
        # full (R, C) planes read straight from the input VMEM buffer).
        acc = x_ref[0] * p(_W1_OFF + 0 * 6 + j)
        for k in range(1, 4):
            acc = acc + x_ref[k] * p(_W1_OFF + k * 6 + j)
        acc = acc + p(_B1_OFF + j)

        # Sigmoid: exp on the EUP; approx reciprocal also on the EUP.
        if approx_sigmoid:
            h = pl.reciprocal(
                (1.0 + jnp.exp(-acc)).astype(jnp.float32), approx=True
            ).astype(cdt)
        else:
            h = jax.nn.sigmoid(acc)

        # Scatter this hidden unit into the 3 output accumulators.
        for i in range(3):
            term = h * p(_W2_OFF + j * 3 + i)
            out[i] = term if out[i] is None else out[i] + term

    # Direct, lane-dense, full-sublane stores of each output plane.
    for i in range(3):
        o_ref[i] = (out[i] + p(_B2_OFF + i)).astype(o_ref.dtype)


def _tile_plan(batch: int, lane: int, rows_per_tile: int):
    """Pick (lane, rows-per-tile, num_tiles, padded_batch)."""
    lane = max(128, _round_up(lane, 128))
    lane = min(lane, _round_up(batch, 128))          # avoid gross padding for tiny B
    rows_per_tile = max(8, _round_up(rows_per_tile, 8))

    n_rows = _cdiv(batch, lane)
    num_tiles = _cdiv(n_rows, rows_per_tile)
    # v7x megacore: prefer >= 2 (and an even number of) tiles when there is
    # enough work, so the "parallel" batch axis actually splits across TCs.
    if n_rows >= 16 and num_tiles == 1:
        num_tiles = 2
    if num_tiles > 1 and num_tiles % 2:
        num_tiles += 1

    r_blk = _round_up(_cdiv(n_rows, num_tiles), 8)
    n_rows_pad = num_tiles * r_blk
    return lane, r_blk, num_tiles, n_rows_pad * lane


def my_iris_forward_feature_major(
    xt, w1, b1, w2, b2, *,
    lane: int = 512, rows_per_tile: int = 256,
    approx_sigmoid: bool = True, compute_dtype=jnp.float32,
):
    """Feature-major MyIris forward: xt:(4,B) -> (3,B). No wrapper transposes."""
    assert xt.shape[0] == 4
    B = xt.shape[1]

    # All 51 parameters packed into one flat f32 vector (SMEM-resident).
    params = jnp.concatenate(
        [w1.reshape(-1), b1.reshape(-1), w2.reshape(-1), b2.reshape(-1)]
    ).astype(jnp.float32)
    assert params.shape == (_N_PARAMS,)

    lane, r_blk, num_tiles, b_pad = _tile_plan(B, lane, rows_per_tile)

    xt = xt.astype(compute_dtype)
    if b_pad != B:
        # Zero padding stays finite through sigmoid and is sliced off below.
        xt = jnp.pad(xt, ((0, 0), (0, b_pad - B)))
    n_rows = b_pad // lane
    xr = xt.reshape(4, n_rows, lane)   # free (row-major) reshape

    in_itemsize = jnp.dtype(compute_dtype).itemsize
    plane_bytes = r_blk * lane * 4
    tile_io_bytes = 2 * (4 * in_itemsize + 3 * 4) * r_blk * lane   # dbl-buffered IO
    vmem_limit = max(int(tile_io_bytes + 12 * plane_bytes + (4 << 20)), 32 << 20)

    cost = pl.CostEstimate(
        flops=90 * b_pad,
        transcendentals=12 * b_pad,
        bytes_accessed=(4 * in_itemsize + 3 * 4) * b_pad + _N_PARAMS * 4,
    )

    kernel = functools.partial(_iris_kernel, approx_sigmoid=approx_sigmoid)

    yr = pl.pallas_call(
        kernel,
        out_shape=jax.ShapeDtypeStruct((3, n_rows, lane), jnp.float32),
        grid=(num_tiles,),
        in_specs=[
            # Whole packed parameter vector, resident in SMEM for all steps.
            pl.BlockSpec(memory_space=pltpu.MemorySpace.SMEM),
            # Double-buffered activation tile: full-sublane, lane-dense planes.
            pl.BlockSpec((4, r_blk, lane), lambda i: (0, i, 0)),
        ],
        out_specs=pl.BlockSpec((3, r_blk, lane), lambda i: (0, i, 0)),
        compiler_params=pltpu.CompilerParams(
            dimension_semantics=("parallel",),   # batch tiles are independent
            vmem_limit_bytes=vmem_limit,
        ),
        cost_estimate=cost,
    )(params, xr)

    return yr.reshape(3, b_pad)[:, :B]


def my_iris_forward(
    x, w1, b1, w2, b2, *,
    lane: int = 512, rows_per_tile: int = 256,
    approx_sigmoid: bool = True, compute_dtype=jnp.float32,
):
    """PyTorch-interface MyIris forward: x:(B,4) -> (B,3).

    The batch-major <-> feature-major transposes are wrapper plumbing only;
    callers that already keep activations feature-major should use
    my_iris_forward_feature_major() and skip them entirely.
    """
    yt = my_iris_forward_feature_major(
        x.T, w1, b1, w2, b2,
        lane=lane, rows_per_tile=rows_per_tile,
        approx_sigmoid=approx_sigmoid, compute_dtype=compute_dtype,
    )
    return yt.T


def my_iris_reference(x, w1, b1, w2, b2):
    h = jax.nn.sigmoid(x.astype(jnp.float32) @ w1 + b1)
    return h @ w2 + b2


if __name__ == "__main__":
    key = jax.random.PRNGKey(0)
    kx, kx2, k1, kb1, k2, kb2 = jax.random.split(key, 6)

    # Parameters stored as (in, out) = transposed PyTorch nn.Linear weights.
    w1 = jax.random.normal(k1, (4, 6), dtype=jnp.float32) * 0.5
    b1 = jax.random.normal(kb1, (6,), dtype=jnp.float32) * 0.1
    w2 = jax.random.normal(k2, (6, 3), dtype=jnp.float32) * 0.5
    b2 = jax.random.normal(kb2, (3,), dtype=jnp.float32) * 0.1

    # (1) Small ragged batch (exercises lane/row padding, single tile) with the
    #     exact sigmoid path -> tight tolerance check.
    B1 = 300
    x1 = jax.random.normal(kx, (B1, 4), dtype=jnp.float32)
    out1 = my_iris_forward(x1, w1, b1, w2, b2, approx_sigmoid=False)
    jax.block_until_ready(out1)
    ref1 = my_iris_reference(x1, w1, b1, w2, b2)
    assert out1.shape == (B1, 3)
    assert jnp.allclose(out1, ref1, atol=1e-5, rtol=1e-5)

    # (2) Multi-tile grid (lane=128, 8-row tiles -> 4 parallel grid steps) with
    #     the EUP exp + approx-reciprocal sigmoid -> looser tolerance.
    B2 = 4096
    x2 = jax.random.normal(kx2, (B2, 4), dtype=jnp.float32)
    out2 = my_iris_forward(
        x2, w1, b1, w2, b2, lane=128, rows_per_tile=8, approx_sigmoid=True
    )
    jax.block_until_ready(out2)
    ref2 = my_iris_reference(x2, w1, b1, w2, b2)
    assert out2.shape == (B2, 3)
    assert jnp.allclose(out2, ref2, atol=2e-2, rtol=2e-2)

    # TODO(synk): on v6e/v7x pass compute_dtype=jnp.bfloat16 for bf16 VPU/EUP
    # math (keep f32 on v5e); not enabled by default to stay chip-agnostic.

    print("KERNEL_OK")
</pallas_src>

<mosaic_0001>
module attributes {stable_mosaic.version = 11 : i64} {
  func.func @_iris_kernel(%arg0: i32, %arg1: memref<51xf32, #tpu.memory_space<smem>>, %arg2: memref<4x8x384xf32, #tpu.memory_space<vmem>>, %arg3: memref<3x8x384xf32, #tpu.memory_space<vmem>>) attributes {dimension_semantics = [#tpu.dimension_semantics<parallel>], iteration_bounds = array<i64: 1>, scalar_prefetch = 0 : i64, scratch_operands = 0 : i64, tpu.core_type = #tpu.core_type<tc>, window_params = [{transform_indices = @transform_0, window_bounds = array<i64: 51>}, {transform_indices = @transform_1, window_bounds = array<i64: 4, 8, 384>}, {transform_indices = @transform_2, window_bounds = array<i64: 3, 8, 384>}]} {
    %c0 = arith.constant 0 : index
    %c0_0 = arith.constant 0 : index
    %c0_1 = arith.constant 0 : index
    %0 = vector.load %arg2[%c0, %c0_0, %c0_1] : memref<4x8x384xf32, #tpu.memory_space<vmem>>, vector<1x8x384xf32>
    %1 = vector.shape_cast %0 : vector<1x8x384xf32> to vector<8x384xf32>
    %c0_2 = arith.constant 0 : index
    %2 = memref.load %arg1[%c0_2] : memref<51xf32, #tpu.memory_space<smem>>
    %3 = vector.broadcast %2 : f32 to vector<8x384xf32>
    %4 = arith.mulf %1, %3 : vector<8x384xf32>
    %c1 = arith.constant 1 : index
    %c0_3 = arith.constant 0 : index
    %c0_4 = arith.constant 0 : index
    %5 = vector.load %arg2[%c1, %c0_3, %c0_4] : memref<4x8x384xf32, #tpu.memory_space<vmem>>, vector<1x8x384xf32>
    %6 = vector.shape_cast %5 : vector<1x8x384xf32> to vector<8x384xf32>
    %c6 = arith.constant 6 : index
    %7 = memref.load %arg1[%c6] : memref<51xf32, #tpu.memory_space<smem>>
    %8 = vector.broadcast %7 : f32 to vector<8x384xf32>
    %9 = arith.mulf %6, %8 : vector<8x384xf32>
    %10 = arith.addf %4, %9 : vector<8x384xf32>
    %c2 = arith.constant 2 : index
    %c0_5 = arith.constant 0 : index
    %c0_6 = arith.constant 0 : index
    %11 = vector.load %arg2[%c2, %c0_5, %c0_6] : memref<4x8x384xf32, #tpu.memory_space<vmem>>, vector<1x8x384xf32>
    %12 = vector.shape_cast %11 : vector<1x8x384xf32> to vector<8x384xf32>
    %c12 = arith.constant 12 : index
    %13 = memref.load %arg1[%c12] : memref<51xf32, #tpu.memory_space<smem>>
    %14 = vector.broadcast %13 : f32 to vector<8x384xf32>
    %15 = arith.mulf %12, %14 : vector<8x384xf32>
    %16 = arith.addf %10, %15 : vector<8x384xf32>
    %c3 = arith.constant 3 : index
    %c0_7 = arith.constant 0 : index
    %c0_8 = arith.constant 0 : index
    %17 = vector.load %arg2[%c3, %c0_7, %c0_8] : memref<4x8x384xf32, #tpu.memory_space<vmem>>, vector<1x8x384xf32>
    %18 = vector.shape_cast %17 : vector<1x8x384xf32> to vector<8x384xf32>
    %c18 = arith.constant 18 : index
    %19 = memref.load %arg1[%c18] : memref<51xf32, #tpu.memory_space<smem>>
    %20 = vector.broadcast %19 : f32 to vector<8x384xf32>
    %21 = arith.mulf %18, %20 : vector<8x384xf32>
    %22 = arith.addf %16, %21 : vector<8x384xf32>
    %c24 = arith.constant 24 : index
    %23 = memref.load %arg1[%c24] : memref<51xf32, #tpu.memory_space<smem>>
    %24 = vector.broadcast %23 : f32 to vector<8x384xf32>
    %25 = arith.addf %22, %24 : vector<8x384xf32>
    %26 = arith.negf %25 : vector<8x384xf32>
    %27 = math.exp %26 : vector<8x384xf32>
    %cst = arith.constant 1.000000e+00 : f32
    %28 = vector.broadcast %cst : f32 to vector<8x384xf32>
    %29 = arith.addf %28, %27 : vector<8x384xf32>
    %30 = arith.divf %28, %29 : vector<8x384xf32>
    %c30 = arith.constant 30 : index
    %31 = memref.load %arg1[%c30] : memref<51xf32, #tpu.memory_space<smem>>
    %32 = vector.broadcast %31 : f32 to vector<8x384xf32>
    %33 = arith.mulf %30, %32 : vector<8x384xf32>
    %c31 = arith.constant 31 : index
    %34 = memref.load %arg1[%c31] : memref<51xf32, #tpu.memory_space<smem>>
    %35 = vector.broadcast %34 : f32 to vector<8x384xf32>
    %36 = arith.mulf %30, %35 : vector<8x384xf32>
    %c32 = arith.constant 32 : index
    %37 = memref.load %arg1[%c32] : memref<51xf32, #tpu.memory_space<smem>>
    %38 = vector.broadcast %37 : f32 to vector<8x384xf32>
    %39 = arith.mulf %30, %38 : vector<8x384xf32>
    %c0_9 = arith.constant 0 : index
    %c0_10 = arith.constant 0 : index
    %c0_11 = arith.constant 0 : index
    %40 = vector.load %arg2[%c0_9, %c0_10, %c0_11] : memref<4x8x384xf32, #tpu.memory_space<vmem>>, vector<1x8x384xf32>
    %41 = vector.shape_cast %40 : vector<1x8x384xf32> to vector<8x384xf32>
    %c1_12 = arith.constant 1 : index
    %42 = memref.load %arg1[%c1_12] : memref<51xf32, #tpu.memory_space<smem>>
    %43 = vector.broadcast %42 : f32 to vector<8x384xf32>
    %44 = arith.mulf %41, %43 : vector<8x384xf32>
    %c1_13 = arith.constant 1 : index
    %c0_14 = arith.constant 0 : index
    %c0_15 = arith.constant 0 : index
    %45 = vector.load %arg2[%c1_13, %c0_14, %c0_15] : memref<4x8x384xf32, #tpu.memory_space<vmem>>, vector<1x8x384xf32>
    %46 = vector.shape_cast %45 : vector<1x8x384xf32> to vector<8x384xf32>
    %c7 = arith.constant 7 : index
    %47 = memref.load %arg1[%c7] : memref<51xf32, #tpu.memory_space<smem>>
    %48 = vector.broadcast %47 : f32 to vector<8x384xf32>
    %49 = arith.mulf %46, %48 : vector<8x384xf32>
    %50 = arith.addf %44, %49 : vector<8x384xf32>
    %c2_16 = arith.constant 2 : index
    %c0_17 = arith.constant 0 : index
    %c0_18 = arith.constant 0 : index
    %51 = vector.load %arg2[%c2_16, %c0_17, %c0_18] : memref<4x8x384xf32, #tpu.memory_space<vmem>>, vector<1x8x384xf32>
    %52 = vector.shape_cast %51 : vector<1x8x384xf32> to vector<8x384xf32>
    %c13 = arith.constant 13 : index
    %53 = memref.load %arg1[%c13] : memref<51xf32, #tpu.memory_space<smem>>
    %54 = vector.broadcast %53 : f32 to vector<8x384xf32>
    %55 = arith.mulf %52, %54 : vector<8x384xf32>
    %56 = arith.addf %50, %55 : vector<8x384xf32>
    %c3_19 = arith.constant 3 : index
    %c0_20 = arith.constant 0 : index
    %c0_21 = arith.constant 0 : index
    %57 = vector.load %arg2[%c3_19, %c0_20, %c0_21] : memref<4x8x384xf32, #tpu.memory_space<vmem>>, vector<1x8x384xf32>
    %58 = vector.shape_cast %57 : vector<1x8x384xf32> to vector<8x384xf32>
    %c19 = arith.constant 19 : index
    %59 = memref.load %arg1[%c19] : memref<51xf32, #tpu.memory_space<smem>>
    %60 = vector.broadcast %59 : f32 to vector<8x384xf32>
    %61 = arith.mulf %58, %60 : vector<8x384xf32>
    %62 = arith.addf %56, %61 : vector<8x384xf32>
    %c25 = arith.constant 25 : index
    %63 = memref.load %arg1[%c25] : memref<51xf32, #tpu.memory_space<smem>>
    %64 = vector.broadcast %63 : f32 to vector<8x384xf32>
    %65 = arith.addf %62, %64 : vector<8x384xf32>
    %66 = arith.negf %65 : vector<8x384xf32>
    %67 = math.exp %66 : vector<8x384xf32>
    %cst_22 = arith.constant 1.000000e+00 : f32
    %68 = vector.broadcast %cst_22 : f32 to vector<8x384xf32>
    %69 = arith.addf %68, %67 : vector<8x384xf32>
    %70 = arith.divf %68, %69 : vector<8x384xf32>
    %c33 = arith.constant 33 : index
    %71 = memref.load %arg1[%c33] : memref<51xf32, #tpu.memory_space<smem>>
    %72 = vector.broadcast %71 : f32 to vector<8x384xf32>
    %73 = arith.mulf %70, %72 : vector<8x384xf32>
    %74 = arith.addf %33, %73 : vector<8x384xf32>
    %c34 = arith.constant 34 : index
    %75 = memref.load %arg1[%c34] : memref<51xf32, #tpu.memory_space<smem>>
    %76 = vector.broadcast %75 : f32 to vector<8x384xf32>
    %77 = arith.mulf %70, %76 : vector<8x384xf32>
    %78 = arith.addf %36, %77 : vector<8x384xf32>
    %c35 = arith.constant 35 : index
    %79 = memref.load %arg1[%c35] : memref<51xf32, #tpu.memory_space<smem>>
    %80 = vector.broadcast %79 : f32 to vector<8x384xf32>
    %81 = arith.mulf %70, %80 : vector<8x384xf32>
    %82 = arith.addf %39, %81 : vector<8x384xf32>
    %c0_23 = arith.constant 0 : index
    %c0_24 = arith.constant 0 : index
    %c0_25 = arith.constant 0 : index
    %83 = vector.load %arg2[%c0_23, %c0_24, %c0_25] : memref<4x8x384xf32, #tpu.memory_space<vmem>>, vector<1x8x384xf32>
    %84 = vector.shape_cast %83 : vector<1x8x384xf32> to vector<8x384xf32>
    %c2_26 = arith.constant 2 : index
    %85 = memref.load %arg1[%c2_26] : memref<51xf32, #tpu.memory_space<smem>>
    %86 = vector.broadcast %85 : f32 to vector<8x384xf32>
    %87 = arith.mulf %84, %86 : vector<8x384xf32>
    %c1_27 = arith.constant 1 : index
    %c0_28 = arith.constant 0 : index
    %c0_29 = arith.constant 0 : index
    %88 = vector.load %arg2[%c1_27, %c0_28, %c0_29] : memref<4x8x384xf32, #tpu.memory_space<vmem>>, vector<1x8x384xf32>
    %89 = vector.shape_cast %88 : vector<1x8x384xf32> to vector<8x384xf32>
    %c8 = arith.constant 8 : index
    %90 = memref.load %arg1[%c8] : memref<51xf32, #tpu.memory_space<smem>>
    %91 = vector.broadcast %90 : f32 to vector<8x384xf32>
    %92 = arith.mulf %89, %91 : vector<8x384xf32>
    %93 = arith.addf %87, %92 : vector<8x384xf32>
    %c2_30 = arith.constant 2 : index
    %c0_31 = arith.constant 0 : index
    %c0_32 = arith.constant 0 : index
    %94 = vector.load %arg2[%c2_30, %c0_31, %c0_32] : memref<4x8x384xf32, #tpu.memory_space<vmem>>, vector<1x8x384xf32>
    %95 = vector.shape_cast %94 : vector<1x8x384xf32> to vector<8x384xf32>
    %c14 = arith.constant 14 : index
    %96 = memref.load %arg1[%c14] : memref<51xf32, #tpu.memory_space<smem>>
    %97 = vector.broadcast %96 : f32 to vector<8x384xf32>
    %98 = arith.mulf %95, %97 : vector<8x384xf32>
    %99 = arith.addf %93, %98 : vector<8x384xf32>
    %c3_33 = arith.constant 3 : index
    %c0_34 = arith.constant 0 : index
    %c0_35 = arith.constant 0 : index
    %100 = vector.load %arg2[%c3_33, %c0_34, %c0_35] : memref<4x8x384xf32, #tpu.memory_space<vmem>>, vector<1x8x384xf32>
    %101 = vector.shape_cast %100 : vector<1x8x384xf32> to vector<8x384xf32>
    %c20 = arith.constant 20 : index
    %102 = memref.load %arg1[%c20] : memref<51xf32, #tpu.memory_space<smem>>
    %103 = vector.broadcast %102 : f32 to vector<8x384xf32>
    %104 = arith.mulf %101, %103 : vector<8x384xf32>
    %105 = arith.addf %99, %104 : vector<8x384xf32>
    %c26 = arith.constant 26 : index
    %106 = memref.load %arg1[%c26] : memref<51xf32, #tpu.memory_space<smem>>
    %107 = vector.broadcast %106 : f32 to vector<8x384xf32>
    %108 = arith.addf %105, %107 : vector<8x384xf32>
    %109 = arith.negf %108 : vector<8x384xf32>
    %110 = math.exp %109 : vector<8x384xf32>
    %cst_36 = arith.constant 1.000000e+00 : f32
    %111 = vector.broadcast %cst_36 : f32 to vector<8x384xf32>
    %112 = arith.addf %111, %110 : vector<8x384xf32>
    %113 = arith.divf %111, %112 : vector<8x384xf32>
    %c36 = arith.constant 36 : index
    %114 = memref.load %arg1[%c36] : memref<51xf32, #tpu.memory_space<smem>>
    %115 = vector.broadcast %114 : f32 to vector<8x384xf32>
    %116 = arith.mulf %113, %115 : vector<8x384xf32>
    %117 = arith.addf %74, %116 : vector<8x384xf32>
    %c37 = arith.constant 37 : index
    %118 = memref.load %arg1[%c37] : memref<51xf32, #tpu.memory_space<smem>>
    %119 = vector.broadcast %118 : f32 to vector<8x384xf32>
    %120 = arith.mulf %113, %119 : vector<8x384xf32>
    %121 = arith.addf %78, %120 : vector<8x384xf32>
    %c38 = arith.constant 38 : index
    %122 = memref.load %arg1[%c38] : memref<51xf32, #tpu.memory_space<smem>>
    %123 = vector.broadcast %122 : f32 to vector<8x384xf32>
    %124 = arith.mulf %113, %123 : vector<8x384xf32>
    %125 = arith.addf %82, %124 : vector<8x384xf32>
    %c0_37 = arith.constant 0 : index
    %c0_38 = arith.constant 0 : index
    %c0_39 = arith.constant 0 : index
    %126 = vector.load %arg2[%c0_37, %c0_38, %c0_39] : memref<4x8x384xf32, #tpu.memory_space<vmem>>, vector<1x8x384xf32>
    %127 = vector.shape_cast %126 : vector<1x8x384xf32> to vector<8x384xf32>
    %c3_40 = arith.constant 3 : index
    %128 = memref.load %arg1[%c3_40] : memref<51xf32, #tpu.memory_space<smem>>
    %129 = vector.broadcast %128 : f32 to vector<8x384xf32>
    %130 = arith.mulf %127, %129 : vector<8x384xf32>
    %c1_41 = arith.constant 1 : index
    %c0_42 = arith.constant 0 : index
    %c0_43 = arith.constant 0 : index
    %131 = vector.load %arg2[%c1_41, %c0_42, %c0_43] : memref<4x8x384xf32, #tpu.memory_space<vmem>>, vector<1x8x384xf32>
    %132 = vector.shape_cast %131 : vector<1x8x384xf32> to vector<8x384xf32>
    %c9 = arith.constant 9 : index
    %133 = memref.load %arg1[%c9] : memref<51xf32, #tpu.memory_space<smem>>
    %134 = vector.broadcast %133 : f32 to vector<8x384xf32>
    %135 = arith.mulf %132, %134 : vector<8x384xf32>
    %136 = arith.addf %130, %135 : vector<8x384xf32>
    %c2_44 = arith.constant 2 : index
    %c0_45 = arith.constant 0 : index
    %c0_46 = arith.constant 0 : index
    %137 = vector.load %arg2[%c2_44, %c0_45, %c0_46] : memref<4x8x384xf32, #tpu.memory_space<vmem>>, vector<1x8x384xf32>
    %138 = vector.shape_cast %137 : vector<1x8x384xf32> to vector<8x384xf32>
    %c15 = arith.constant 15 : index
    %139 = memref.load %arg1[%c15] : memref<51xf32, #tpu.memory_space<smem>>
    %140 = vector.broadcast %139 : f32 to vector<8x384xf32>
    %141 = arith.mulf %138, %140 : vector<8x384xf32>
    %142 = arith.addf %136, %141 : vector<8x384xf32>
    %c3_47 = arith.constant 3 : index
    %c0_48 = arith.constant 0 : index
    %c0_49 = arith.constant 0 : index
    %143 = vector.load %arg2[%c3_47, %c0_48, %c0_49] : memref<4x8x384xf32, #tpu.memory_space<vmem>>, vector<1x8x384xf32>
    %144 = vector.shape_cast %143 : vector<1x8x384xf32> to vector<8x384xf32>
    %c21 = arith.constant 21 : index
    %145 = memref.load %arg1[%c21] : memref<51xf32, #tpu.memory_space<smem>>
    %146 = vector.broadcast %145 : f32 to vector<8x384xf32>
    %147 = arith.mulf %144, %146 : vector<8x384xf32>
    %148 = arith.addf %142, %147 : vector<8x384xf32>
    %c27 = arith.constant 27 : index
    %149 = memref.load %arg1[%c27] : memref<51xf32, #tpu.memory_space<smem>>
    %150 = vector.broadcast %149 : f32 to vector<8x384xf32>
    %151 = arith.addf %148, %150 : vector<8x384xf32>
    %152 = arith.negf %151 : vector<8x384xf32>
    %153 = math.exp %152 : vector<8x384xf32>
    %cst_50 = arith.constant 1.000000e+00 : f32
    %154 = vector.broadcast %cst_50 : f32 to vector<8x384xf32>
    %155 = arith.addf %154, %153 : vector<8x384xf32>
    %156 = arith.divf %154, %155 : vector<8x384xf32>
    %c39 = arith.constant 39 : index
    %157 = memref.load %arg1[%c39] : memref<51xf32, #tpu.memory_space<smem>>
    %158 = vector.broadcast %157 : f32 to vector<8x384xf32>
    %159 = arith.mulf %156, %158 : vector<8x384xf32>
    %160 = arith.addf %117, %159 : vector<8x384xf32>
    %c40 = arith.constant 40 : index
    %161 = memref.load %arg1[%c40] : memref<51xf32, #tpu.memory_space<smem>>
    %162 = vector.broadcast %161 : f32 to vector<8x384xf32>
    %163 = arith.mulf %156, %162 : vector<8x384xf32>
    %164 = arith.addf %121, %163 : vector<8x384xf32>
    %c41 = arith.constant 41 : index
    %165 = memref.load %arg1[%c41] : memref<51xf32, #tpu.memory_space<smem>>
    %166 = vector.broadcast %165 : f32 to vector<8x384xf32>
    %167 = arith.mulf %156, %166 : vector<8x384xf32>
    %168 = arith.addf %125, %167 : vector<8x384xf32>
    %c0_51 = arith.constant 0 : index
    %c0_52 = arith.constant 0 : index
    %c0_53 = arith.constant 0 : index
    %169 = vector.load %arg2[%c0_51, %c0_52, %c0_53] : memref<4x8x384xf32, #tpu.memory_space<vmem>>, vector<1x8x384xf32>
    %170 = vector.shape_cast %169 : vector<1x8x384xf32> to vector<8x384xf32>
    %c4 = arith.constant 4 : index
    %171 = memref.load %arg1[%c4] : memref<51xf32, #tpu.memory_space<smem>>
    %172 = vector.broadcast %171 : f32 to vector<8x384xf32>
    %173 = arith.mulf %170, %172 : vector<8x384xf32>
    %c1_54 = arith.constant 1 : index
    %c0_55 = arith.constant 0 : index
    %c0_56 = arith.constant 0 : index
    %174 = vector.load %arg2[%c1_54, %c0_55, %c0_56] : memref<4x8x384xf32, #tpu.memory_space<vmem>>, vector<1x8x384xf32>
    %175 = vector.shape_cast %174 : vector<1x8x384xf32> to vector<8x384xf32>
    %c10 = arith.constant 10 : index
    %176 = memref.load %arg1[%c10] : memref<51xf32, #tpu.memory_space<smem>>
    %177 = vector.broadcast %176 : f32 to vector<8x384xf32>
    %178 = arith.mulf %175, %177 : vector<8x384xf32>
    %179 = arith.addf %173, %178 : vector<8x384xf32>
    %c2_57 = arith.constant 2 : index
    %c0_58 = arith.constant 0 : index
    %c0_59 = arith.constant 0 : index
    %180 = vector.load %arg2[%c2_57, %c0_58, %c0_59] : memref<4x8x384xf32, #tpu.memory_space<vmem>>, vector<1x8x384xf32>
    %181 = vector.shape_cast %180 : vector<1x8x384xf32> to vector<8x384xf32>
    %c16 = arith.constant 16 : index
    %182 = memref.load %arg1[%c16] : memref<51xf32, #tpu.memory_space<smem>>
    %183 = vector.broadcast %182 : f32 to vector<8x384xf32>
    %184 = arith.mulf %181, %183 : vector<8x384xf32>
    %185 = arith.addf %179, %184 : vector<8x384xf32>
    %c3_60 = arith.constant 3 : index
    %c0_61 = arith.constant 0 : index
    %c0_62 = arith.constant 0 : index
    %186 = vector.load %arg2[%c3_60, %c0_61, %c0_62] : memref<4x8x384xf32, #tpu.memory_space<vmem>>, vector<1x8x384xf32>
    %187 = vector.shape_cast %186 : vector<1x8x384xf32> to vector<8x384xf32>
    %c22 = arith.constant 22 : index
    %188 = memref.load %arg1[%c22] : memref<51xf32, #tpu.memory_space<smem>>
    %189 = vector.broadcast %188 : f32 to vector<8x384xf32>
    %190 = arith.mulf %187, %189 : vector<8x384xf32>
    %191 = arith.addf %185, %190 : vector<8x384xf32>
    %c28 = arith.constant 28 : index
    %192 = memref.load %arg1[%c28] : memref<51xf32, #tpu.memory_space<smem>>
    %193 = vector.broadcast %192 : f32 to vector<8x384xf32>
    %194 = arith.addf %191, %193 : vector<8x384xf32>
    %195 = arith.negf %194 : vector<8x384xf32>
    %196 = math.exp %195 : vector<8x384xf32>
    %cst_63 = arith.constant 1.000000e+00 : f32
    %197 = vector.broadcast %cst_63 : f32 to vector<8x384xf32>
    %198 = arith.addf %197, %196 : vector<8x384xf32>
    %199 = arith.divf %197, %198 : vector<8x384xf32>
    %c42 = arith.constant 42 : index
    %200 = memref.load %arg1[%c42] : memref<51xf32, #tpu.memory_space<smem>>
    %201 = vector.broadcast %200 : f32 to vector<8x384xf32>
    %202 = arith.mulf %199, %201 : vector<8x384xf32>
    %203 = arith.addf %160, %202 : vector<8x384xf32>
    %c43 = arith.constant 43 : index
    %204 = memref.load %arg1[%c43] : memref<51xf32, #tpu.memory_space<smem>>
    %205 = vector.broadcast %204 : f32 to vector<8x384xf32>
    %206 = arith.mulf %199, %205 : vector<8x384xf32>
    %207 = arith.addf %164, %206 : vector<8x384xf32>
    %c44 = arith.constant 44 : index
    %208 = memref.load %arg1[%c44] : memref<51xf32, #tpu.memory_space<smem>>
    %209 = vector.broadcast %208 : f32 to vector<8x384xf32>
    %210 = arith.mulf %199, %209 : vector<8x384xf32>
    %211 = arith.addf %168, %210 : vector<8x384xf32>
    %c0_64 = arith.constant 0 : index
    %c0_65 = arith.constant 0 : index
    %c0_66 = arith.constant 0 : index
    %212 = vector.load %arg2[%c0_64, %c0_65, %c0_66] : memref<4x8x384xf32, #tpu.memory_space<vmem>>, vector<1x8x384xf32>
    %213 = vector.shape_cast %212 : vector<1x8x384xf32> to vector<8x384xf32>
    %c5 = arith.constant 5 : index
    %214 = memref.load %arg1[%c5] : memref<51xf32, #tpu.memory_space<smem>>
    %215 = vector.broadcast %214 : f32 to vector<8x384xf32>
    %216 = arith.mulf %213, %215 : vector<8x384xf32>
    %c1_67 = arith.constant 1 : index
    %c0_68 = arith.constant 0 : index
    %c0_69 = arith.constant 0 : index
    %217 = vector.load %arg2[%c1_67, %c0_68, %c0_69] : memref<4x8x384xf32, #tpu.memory_space<vmem>>, vector<1x8x384xf32>
    %218 = vector.shape_cast %217 : vector<1x8x384xf32> to vector<8x384xf32>
    %c11 = arith.constant 11 : index
    %219 = memref.load %arg1[%c11] : memref<51xf32, #tpu.memory_space<smem>>
    %220 = vector.broadcast %219 : f32 to vector<8x384xf32>
    %221 = arith.mulf %218, %220 : vector<8x384xf32>
    %222 = arith.addf %216, %221 : vector<8x384xf32>
    %c2_70 = arith.constant 2 : index
    %c0_71 = arith.constant 0 : index
    %c0_72 = arith.constant 0 : index
    %223 = vector.load %arg2[%c2_70, %c0_71, %c0_72] : memref<4x8x384xf32, #tpu.memory_space<vmem>>, vector<1x8x384xf32>
    %224 = vector.shape_cast %223 : vector<1x8x384xf32> to vector<8x384xf32>
    %c17 = arith.constant 17 : index
    %225 = memref.load %arg1[%c17] : memref<51xf32, #tpu.memory_space<smem>>
    %226 = vector.broadcast %225 : f32 to vector<8x384xf32>
    %227 = arith.mulf %224, %226 : vector<8x384xf32>
    %228 = arith.addf %222, %227 : vector<8x384xf32>
    %c3_73 = arith.constant 3 : index
    %c0_74 = arith.constant 0 : index
    %c0_75 = arith.constant 0 : index
    %229 = vector.load %arg2[%c3_73, %c0_74, %c0_75] : memref<4x8x384xf32, #tpu.memory_space<vmem>>, vector<1x8x384xf32>
    %230 = vector.shape_cast %229 : vector<1x8x384xf32> to vector<8x384xf32>
    %c23 = arith.constant 23 : index
    %231 = memref.load %arg1[%c23] : memref<51xf32, #tpu.memory_space<smem>>
    %232 = vector.broadcast %231 : f32 to vector<8x384xf32>
    %233 = arith.mulf %230, %232 : vector<8x384xf32>
    %234 = arith.addf %228, %233 : vector<8x384xf32>
    %c29 = arith.constant 29 : index
    %235 = memref.load %arg1[%c29] : memref<51xf32, #tpu.memory_space<smem>>
    %236 = vector.broadcast %235 : f32 to vector<8x384xf32>
    %237 = arith.addf %234, %236 : vector<8x384xf32>
    %238 = arith.negf %237 : vector<8x384xf32>
    %239 = math.exp %238 : vector<8x384xf32>
    %cst_76 = arith.constant 1.000000e+00 : f32
    %240 = vector.broadcast %cst_76 : f32 to vector<8x384xf32>
    %241 = arith.addf %240, %239 : vector<8x384xf32>
    %242 = arith.divf %240, %241 : vector<8x384xf32>
    %c45 = arith.constant 45 : index
    %243 = memref.load %arg1[%c45] : memref<51xf32, #tpu.memory_space<smem>>
    %244 = vector.broadcast %243 : f32 to vector<8x384xf32>
    %245 = arith.mulf %242, %244 : vector<8x384xf32>
    %246 = arith.addf %203, %245 : vector<8x384xf32>
    %c46 = arith.constant 46 : index
    %247 = memref.load %arg1[%c46] : memref<51xf32, #tpu.memory_space<smem>>
    %248 = vector.broadcast %247 : f32 to vector<8x384xf32>
    %249 = arith.mulf %242, %248 : vector<8x384xf32>
    %250 = arith.addf %207, %249 : vector<8x384xf32>
    %c47 = arith.constant 47 : index
    %251 = memref.load %arg1[%c47] : memref<51xf32, #tpu.memory_space<smem>>
    %252 = vector.broadcast %251 : f32 to vector<8x384xf32>
    %253 = arith.mulf %242, %252 : vector<8x384xf32>
    %254 = arith.addf %211, %253 : vector<8x384xf32>
    %c48 = arith.constant 48 : index
    %255 = memref.load %arg1[%c48] : memref<51xf32, #tpu.memory_space<smem>>
    %256 = vector.broadcast %255 : f32 to vector<8x384xf32>
    %257 = arith.addf %246, %256 : vector<8x384xf32>
    %c0_77 = arith.constant 0 : index
    %c0_78 = arith.constant 0 : index
    %c0_79 = arith.constant 0 : index
    %258 = vector.load %arg3[%c0_77, %c0_78, %c0_79] : memref<3x8x384xf32, #tpu.memory_space<vmem>>, vector<1x8x384xf32>
    %259 = vector.shape_cast %258 : vector<1x8x384xf32> to vector<8x384xf32>
    %260 = vector.shape_cast %257 : vector<8x384xf32> to vector<1x8x384xf32>
    tpu.vector_store %arg3[%c0_77, %c0_78, %c0_79], %260 {strides = array<i32>} : memref<3x8x384xf32, #tpu.memory_space<vmem>>, vector<1x8x384xf32>,
    %c49 = arith.constant 49 : index
    %261 = memref.load %arg1[%c49] : memref<51xf32, #tpu.memory_space<smem>>
    %262 = vector.broadcast %261 : f32 to vector<8x384xf32>
    %263 = arith.addf %250, %262 : vector<8x384xf32>
    %c1_80 = arith.constant 1 : index
    %c0_81 = arith.constant 0 : index
    %c0_82 = arith.constant 0 : index
    %264 = vector.load %arg3[%c1_80, %c0_81, %c0_82] : memref<3x8x384xf32, #tpu.memory_space<vmem>>, vector<1x8x384xf32>
    %265 = vector.shape_cast %264 : vector<1x8x384xf32> to vector<8x384xf32>
    %266 = vector.shape_cast %263 : vector<8x384xf32> to vector<1x8x384xf32>
    tpu.vector_store %arg3[%c1_80, %c0_81, %c0_82], %266 {strides = array<i32>} : memref<3x8x384xf32, #tpu.memory_space<vmem>>, vector<1x8x384xf32>,
    %c50 = arith.constant 50 : index
    %267 = memref.load %arg1[%c50] : memref<51xf32, #tpu.memory_space<smem>>
    %268 = vector.broadcast %267 : f32 to vector<8x384xf32>
    %269 = arith.addf %254, %268 : vector<8x384xf32>
    %c2_83 = arith.constant 2 : index
    %c0_84 = arith.constant 0 : index
    %c0_85 = arith.constant 0 : index
    %270 = vector.load %arg3[%c2_83, %c0_84, %c0_85] : memref<3x8x384xf32, #tpu.memory_space<vmem>>, vector<1x8x384xf32>
    %271 = vector.shape_cast %270 : vector<1x8x384xf32> to vector<8x384xf32>
    %272 = vector.shape_cast %269 : vector<8x384xf32> to vector<1x8x384xf32>
    tpu.vector_store %arg3[%c2_83, %c0_84, %c0_85], %272 {strides = array<i32>} : memref<3x8x384xf32, #tpu.memory_space<vmem>>, vector<1x8x384xf32>,
    return
  }
  func.func @transform_0(%arg0: i32) -> i32 {
    %c0_i32 = arith.constant 0 : i32
    %c0_i32_0 = arith.constant 0 : i32
    return %c0_i32 : i32
  }
  func.func @transform_1(%arg0: i32) -> (i32, i32, i32) {
    %c0_i32 = arith.constant 0 : i32
    %c0_i32_0 = arith.constant 0 : i32
    %c0_i32_1 = arith.constant 0 : i32
    return %c0_i32, %arg0, %c0_i32_0 : i32, i32, i32
  }
  func.func @transform_2(%arg0: i32) -> (i32, i32, i32) {
    %c0_i32 = arith.constant 0 : i32
    %c0_i32_0 = arith.constant 0 : i32
    %c0_i32_1 = arith.constant 0 : i32
    return %c0_i32, %arg0, %c0_i32_0 : i32, i32, i32
  }
}

</mosaic_0001>

<bundles_post_ra>
// kernel: tpu_custom_call.1
= control target key start
LH: loop header
LB: loop body
LE: loop exit
PB: predicated region body
PF: predicated region fallthrough
CT: control target
= control target key end

     0   :  { %7 = vsyncpa [#allocation5], 0  ;;  %s1323_s0 = inlined_call_operand.hbm [shape: f32[51], index: 0, kind: input, shape index: {}]   ;;  %s1324_s1 = inlined_call_operand.hbm [shape: f32[4,8,384], index: 1, kind: input, shape index: {}]   ;;  %s1325_s2 = inlined_call_operand.hbm [shape: f32[3,8,384], index: 2, kind: output, shape index: {}]  }
   0x1   :  { %8 = vsyncpa [#allocation3], 0 }
   0x2   :  { %9 = vsyncpa [#allocation4], 0  ;;  %s688_s11 = scalar_lea.hbm %s1323_s0, 16 }
   0x3   :  { %p689_p0 = scmp.ne.s32.totalorder %s1323_s0, %s688_s11  ;;  %p692_p1 = scmp.lt.u32.totalorder %s688_s11, %s1323_s0 }
   0x5   :  { %p694_p2 = pnand %p692_p1, %p689_p0 }
   0x7   :  { %697 = shalt.err (!%p694_p2)
}
   0x8   :  { %s748_s16 = smov [#allocation2]   ;;  %s749_s19 = smov [#allocation6]  }
   0x9   :  { %17 = dma.hbm_to_smem %s1323_s0, 16, %s748_s16, [#allocation5]  }
   0xa   :  { %s23_s20 = sshll.u32 %s749_s19, 4  ;;  %s698_s23 = scalar_lea.hbm %s1324_s1, 1536  ;;  %s24_s20 = int_to_ptr.vmem [resolvable:$true] %s23_s20 }
   0xb   :  { %p699_p3 = scmp.ne.s32.totalorder %s1324_s1, %s698_s23  ;;  %p702_p4 = scmp.lt.u32.totalorder %s698_s23, %s1324_s1 }
   0xd   :  { %p704_p5 = pnand %p702_p4, %p699_p3 }
   0xf   :  { %707 = shalt.err (!%p704_p5)
}
  0x10   :  { %s708_s28 = scalar_lea.vmem %s24_s20, 1536  ;;  %p713_p7 = scmp.lt.s32.totalorder %s24_s20, %s24_s20 }
  0x11   :  { %p709_p6 = scmp.ne.s32.totalorder %s24_s20, %s708_s28  ;;  %p714_p8 = scmp.lt.s32.totalorder %s708_s28, %s708_s28 }
  0x13   :  { %p715_p9 = por %p714_p8, %p713_p7 }
  0x15   :  { %p716_p10 = pnand %p715_p9, %p709_p6 }
  0x17   :  { %719 = shalt.err (!%p716_p10)
}
  0x18   :  { %s750_s0 = smov 384   ;;  %s751_s29 = smov 24  }
  0x19   :  { %29 = dma.hbm_to_vmem [thread:$0]  %s1324_s1, 1536, %s24_s20, [#allocation3], %s750_s0, %s750_s0, %s751_s29  }
  0x1a   :  { %742 = dma.done.wait [#allocation5], 16  }
  0x1b   :  { %743 = vsyncadd [#allocation5], 4294967280 }
  0x1c   :  { %744 = dma.done.wait [#allocation3], 1536  }
  0x1d   :  { %745 = vsyncadd [#allocation3], 4294965760 }
  0x1e   :  { %36 = sfence }
  0x1f   :  { %s40_s4 = sld [smem:[#allocation2]]  ;;  %s543_s5 = sld [smem:[#allocation2 + $0x6]]  ;;  %v795_v0 = vld [vmem:[#allocation6] sm:$0xff]  ;;  %v797_v1 = vld [vmem:[#allocation6 + $0x18] sm:$0xff]  ;;  %v803_v2 = vld [vmem:[#allocation6 + $0x30] sm:$0xff] }
  0x20   :  { %s544_s6 = sld [smem:[#allocation2 + $0xc]]  ;;  %s545_s7 = sld [smem:[#allocation2 + $0x12]]  ;;  %v805_v3 = vld [vmem:[#allocation6 + $0x48] sm:$0xff] }
  0x21   :  { %s546_s8 = sld [smem:[#allocation2 + $0x18]]  ;;  %s550_s9 = sld [smem:[#allocation2 + $0x1e]]  ;;  %v819_v6 = vld [vmem:[#allocation6 + $0x8] sm:$0xff] }
  0x22   :  { %s553_s10 = sld [smem:[#allocation2 + $0x1]]  ;;  %s554_s11 = sld [smem:[#allocation2 + $0x7]] }
  0x23   :  { %s799_s12 = sld [smem:[#allocation2 + $0xd]]  ;;  %s801_s1 = sld [smem:[#allocation2 + $0x13]] }
  0x24   :  { %s807_s13 = sld [smem:[#allocation2 + $0x19]]  ;;  %s815_s15 = sld [smem:[#allocation2 + $0x2]] }
  0x25   :  { %s809_s14 = sld [smem:[#allocation2 + $0x21]]  ;;  %v811_v4 = vstv %s40_s4  ;;  %v813_v5 = vstv %s543_s5  ;;  %s817_s16 = sld [smem:[#allocation2 + $0x8]] }
  0x26   :  { %v42_v7 = vmul.f32 %v811_v4, %v795_v0  ;;  %v51_v8 = vmul.f32 %v813_v5, %v797_v1  ;;  %v825_v9 = vstv %s544_s6  ;;  %v827_v10 = vstv %s545_s7  ;;  %s829_s17 = sld [smem:[#allocation2 + $0xe]]  ;;  %s831_s18 = sld [smem:[#allocation2 + $0x14]] }
  0x27   :  { %v63_v11 = vmul.f32 %v825_v9, %v803_v2  ;;  %v75_v12 = vmul.f32 %v827_v10, %v805_v3  ;;  %v837_v13 = vstv %s546_s8  ;;  %v839_v14 = vstv %s550_s9  ;;  %s841_s19 = sld [smem:[#allocation2 + $0x1a]]  ;;  %s843_s20 = sld [smem:[#allocation2 + $0x24]] }
  0x28   :  { %v54_v15 = vadd.f32 %v51_v8, %v42_v7  ;;  %v845_v16 = vstv %s553_s10  ;;  %v847_v17 = vstv %s554_s11  ;;  %s849_s21 = sld [smem:[#allocation2 + $0x3]]  ;;  %s851_s22 = sld [smem:[#allocation2 + $0x9]]  ;;  %v855_v18 = vmul.f32 %v811_v4, %v819_v6 }
  0x29   :  { %v121_v19 = vmul.f32 %v845_v16, %v795_v0  ;;  %v126_v20 = vmul.f32 %v847_v17, %v797_v1  ;;  %v862_v21 = vstv %s799_s12  ;;  %v865_v22 = vstv %s801_s1  ;;  %s867_s23 = sld [smem:[#allocation2 + $0xf]]  ;;  %s869_s24 = sld [smem:[#allocation2 + $0x15]] }
  0x2a   :  { %v66_v23 = vadd.f32 %v63_v11, %v54_v15  ;;  %v134_v24 = vmul.f32 %v862_v21, %v803_v2  ;;  %v142_v25 = vmul.f32 %v865_v22, %v805_v3  ;;  %v876_v26 = vstv %s807_s13  ;;  %s878_s25 = sld [smem:[#allocation2 + $0x1b]]  ;;  %s880_s26 = sld [smem:[#allocation2 + $0x27]] }
  0x2b   :  { %v129_v27 = vadd.f32 %v126_v20, %v121_v19  ;;  %v883_v28 = vstv %s809_s14  ;;  %v886_v29 = vstv %s815_s15  ;;  %v889_v30 = vstv %s817_s16  ;;  %s891_s27 = sld [smem:[#allocation2 + $0x4]]  ;;  %s893_s28 = sld [smem:[#allocation2 + $0xa]] }
  0x2c   :  { %v78_v31 = vadd.f32 %v75_v12, %v66_v23  ;;  %v197_v32 = vmul.f32 %v886_v29, %v795_v0  ;;  %v202_v33 = vmul.f32 %v889_v30, %v797_v1  ;;  %v900_v34 = vstv %s829_s17  ;;  %s902_s30 = sld [smem:[#allocation2 + $0x10]]  ;;  %s912_s3 = sld [smem:[#allocation2 + $0x16]] }
  0x2d   :  { %v137_v35 = vadd.f32 %v134_v24, %v129_v27  ;;  %v210_v36 = vmul.f32 %v900_v34, %v803_v2  ;;  %v907_v37 = vstv %s831_s18  ;;  %v910_v38 = vstv %s841_s19  ;;  %s914_s4 = sld [smem:[#allocation2 + $0x1c]]  ;;  %s922_s5 = sld [smem:[#allocation2 + $0x2a]] }
  0x2e   :  { %v83_v39 = vadd.f32 %v837_v13, %v78_v31  ;;  %v205_v40 = vadd.f32 %v202_v33, %v197_v32  ;;  %v218_v41 = vmul.f32 %v907_v37, %v805_v3  ;;  %v920_v42 = vstv %s843_s20  ;;  %s933_s6 = sld [smem:[#allocation2 + $0x5]]  ;;  %s935_s7 = sld [smem:[#allocation2 + $0xb]] }
  0x2f   :  { %v145_v43 = vadd.f32 %v142_v25, %v137_v35  ;;  %v925_v44 = vstv %s849_s21  ;;  %v928_v45 = vstv %s851_s22  ;;  %v931_v46 = vstv %s867_s23  ;;  %s941_s8 = sld [smem:[#allocation2 + $0x11]]  ;;  %s952_s9 = sld [smem:[#allocation2 + $0x17]] }
  0x30   :  { %v547_v47 = vmul.f32 -1.442695, %v83_v39  ;;  %v213_v48 = vadd.f32 %v210_v36, %v205_v40  ;;  %v273_v49 = vmul.f32 %v925_v44, %v795_v0  ;;  %v278_v50 = vmul.f32 %v928_v45, %v797_v1  ;;  %s954_s10 = sld [smem:[#allocation2 + $0x1d]]  ;;  %s969_s12 = sld [smem:[#allocation2 + $0x30]]  ;;  %v1001_v39 = vld [vmem:[#allocation6 + $0x20] sm:$0xff] }
  0x31   :  { %v150_v51 = vadd.f32 %v876_v26, %v145_v43  ;;  %v286_v52 = vmul.f32 %v931_v46, %v803_v2  ;;  %v947_v53 = vstv %s869_s24  ;;  %v950_v54 = vstv %s878_s25  ;;  %s967_s11 = sld [smem:[#allocation2 + $0x2d]]  ;;  %s1145_s1 = sld [smem:[#allocation2 + $0x1f]] }
  0x32   :  { %616 = vpow2.f32 %v547_v47  ;;  %v221_v55 = vadd.f32 %v218_v41, %v213_v48  ;;  %v281_v56 = vadd.f32 %v278_v50, %v273_v49  ;;  %v294_v57 = vmul.f32 %v947_v53, %v805_v3  ;;  %v1014_v48 = vld [vmem:[#allocation6 + $0x38] sm:$0xff]  ;;  %v1016_v49 = vld [vmem:[#allocation6 + $0x50] sm:$0xff]  ;;  %s1156_s13 = sld [smem:[#allocation2 + $0x22]]  ;;  %s1158_s14 = sld [smem:[#allocation2 + $0x25]] }
  0x33   :  { %v558_v58 = vmul.f32 -1.442695, %v150_v51  ;;  %v959_v59 = vstv %s880_s26  ;;  %v962_v60 = vstv %s891_s27  ;;  %v965_v61 = vstv %s893_s28  ;;  %s1170_s15 = sld [smem:[#allocation2 + $0x28]]  ;;  %s1174_s16 = sld [smem:[#allocation2 + $0x2b]] }
  0x34   :  { %v226_v62 = vadd.f32 %v910_v38, %v221_v55  ;;  %v289_v63 = vadd.f32 %v286_v52, %v281_v56  ;;  %v349_v7 = vmul.f32 %v962_v60, %v795_v0  ;;  %v354_v8 = vmul.f32 %v965_v61, %v797_v1  ;;  %s1183_s17 = sld [smem:[#allocation2 + $0x2e]]  ;;  %s1196_s18 = sld [smem:[#allocation2 + $0x31]] }
  0x35   :  { %618 = vpow2.f32 %v558_v58  ;;  %v977_v11 = vstv %s902_s30  ;;  %v980_v12 = vstv %s912_s3  ;;  %v983_v15 = vstv %s914_s4  ;;  %s1215_s19 = sld [smem:[#allocation2 + $0x20]]  ;;  %s1222_s20 = sld [smem:[#allocation2 + $0x23]] }
  0x36   :  { %v569_v19 = vmul.f32 -1.442695, %v226_v62  ;;  %v297_v20 = vadd.f32 %v294_v57, %v289_v63  ;;  %v357_v23 = vadd.f32 %v354_v8, %v349_v7  ;;  %v362_v24 = vmul.f32 %v977_v11, %v803_v2  ;;  %s1224_s21 = sld [smem:[#allocation2 + $0x26]]  ;;  %s1236_s22 = sld [smem:[#allocation2 + $0x29]] }
  0x37   :  { %v370_v25 = vmul.f32 %v980_v12, %v805_v3  ;;  %v990_v27 = vstv %s922_s5  ;;  %v993_v31 = vstv %s933_s6  ;;  %v996_v32 = vstv %s935_s7  ;;  %s1238_s23 = sld [smem:[#allocation2 + $0x2c]]  ;;  %s1255_s24 = sld [smem:[#allocation2 + $0x2f]] }
  0x38   :  { %620 = vpow2.f32 %v569_v19  ;;  %v302_v33 = vadd.f32 %v950_v54, %v297_v20  ;;  %v365_v35 = vadd.f32 %v362_v24, %v357_v23  ;;  %v425_v36 = vmul.f32 %v993_v31, %v795_v0  ;;  %s1278_s25 = sld [smem:[#allocation2 + $0x32]]  ;;  %s752_s26 = smov [#allocation7]  }
  0x39   :  { %v430_v40 = vmul.f32 %v996_v32, %v797_v1  ;;  %v1006_v41 = vstv %s941_s8  ;;  %v1009_v43 = vstv %s952_s9  ;;  %v1012_v47 = vstv %s954_s10  ;;  %s530_s27 = sshll.u32 %s752_s26, 4  ;;  %s531_s27 = int_to_ptr.vmem [resolvable:$true] %s530_s27 }
  0x3a   :  { %v580_v50 = vmul.f32 -1.442695, %v302_v33  ;;  %v373_v51 = vadd.f32 %v370_v25, %v365_v35  ;;  %v438_v0 = vmul.f32 %v1006_v41, %v803_v2  ;;  %v446_v52 = vmul.f32 %v1009_v43, %v805_v3  ;;  %s720_s28 = scalar_lea.vmem %s531_s27, 1152  ;;  %p725_p12 = scmp.lt.s32.totalorder %s531_s27, %s531_s27 }
  0x3b   :  { %v433_v55 = vadd.f32 %v430_v40, %v425_v36  ;;  %v1023_v1 = vstv %s967_s11  ;;  %v1026_v56 = vstv %s969_s12  ;;  %v52_v57 = vmul.f32 %v813_v5, %v1001_v39  ;;  %p721_p11 = scmp.ne.s32.totalorder %s531_s27, %s720_s28  ;;  %p726_p13 = scmp.lt.s32.totalorder %s720_s28, %s720_s28 }
  0x3c   :  { %v617_v58 = vpop.eup %616  ;;  %622 = vpow2.f32 %v580_v50  ;;  %v378_v62 = vadd.f32 %v983_v15, %v373_v51  ;;  %v64_v63 = vmul.f32 %v825_v9, %v1014_v48  ;;  %v76_v2 = vmul.f32 %v827_v10, %v1016_v49 }
  0x3d   :  { %v95_v7 = vadd.f32 1.0, %v617_v58  ;;  %v441_v3 = vadd.f32 %v438_v0, %v433_v55  ;;  %v55_v8 = vadd.f32 %v52_v57, %v855_v18  ;;  %v122_v19 = vmul.f32 %v845_v16, %v819_v6  ;;  %p727_p0 = por %p726_p13, %p725_p12 }
  0x3e   :  { %v591_v20 = vmul.f32 -1.442695, %v378_v62  ;;  %v127_v23 = vmul.f32 %v847_v17, %v1001_v39  ;;  %v135_v24 = vmul.f32 %v862_v21, %v1014_v48  ;;  %v143_v25 = vmul.f32 %v865_v22, %v1016_v49 }
  0x3f   :  { %v619_v33 = vpop.eup %618  ;;  %624 = vrcp.f32 %v95_v7  ;;  %v449_v35 = vadd.f32 %v446_v52, %v441_v3  ;;  %v67_v36 = vadd.f32 %v64_v63, %v55_v8  ;;  %v198_v18 = vmul.f32 %v886_v29, %v819_v6  ;;  %p728_p1 = pnand %p727_p0, %p721_p11 }
  0x40   :  { %v162_v40 = vadd.f32 1.0, %v619_v33  ;;  %626 = vpow2.f32 %v591_v20  ;;  %v130_v50 = vadd.f32 %v127_v23, %v122_v19  ;;  %v203_v51 = vmul.f32 %v889_v30, %v1001_v39 }
  0x41   :  { %v454_v0 = vadd.f32 %v1012_v47, %v449_v35  ;;  %v79_v55 = vadd.f32 %v76_v2, %v67_v36  ;;  %v211_v57 = vmul.f32 %v900_v34, %v1014_v48  ;;  %v219_v58 = vmul.f32 %v907_v37, %v1016_v49 }
  0x42   :  { %v621_v52 = vpop.eup %620  ;;  %628 = vrcp.f32 %v162_v40  ;;  %v138_v62 = vadd.f32 %v135_v24, %v130_v50  ;;  %v206_v63 = vadd.f32 %v203_v51, %v198_v18  ;;  %v274_v7 = vmul.f32 %v925_v44, %v819_v6 }
  0x43   :  { %v238_v3 = vadd.f32 1.0, %v621_v52  ;;  %v602_v8 = vmul.f32 -1.442695, %v454_v0  ;;  %v84_v19 = vadd.f32 %v837_v13, %v79_v55  ;;  %v279_v2 = vmul.f32 %v928_v45, %v1001_v39 }
  0x44   :  { %v146_v20 = vadd.f32 %v143_v25, %v138_v62  ;;  %v214_v23 = vadd.f32 %v211_v57, %v206_v63  ;;  %v287_v33 = vmul.f32 %v931_v46, %v1014_v48  ;;  %v295_v35 = vmul.f32 %v947_v53, %v1016_v49 }
  0x45   :  { %630 = vrcp.f32 %v238_v3  ;;  %v548_v24 = vmul.f32 -1.442695, %v84_v19  ;;  %v282_v36 = vadd.f32 %v279_v2, %v274_v7  ;;  %v350_v18 = vmul.f32 %v962_v60, %v819_v6  ;;  %v1078_v2 = vld [vmem:[#allocation6 + $0x10] sm:$0xff] }
  0x46   :  { %v623_v40 = vpop.eup %622  ;;  %632 = vpow2.f32 %v602_v8  ;;  %v151_v50 = vadd.f32 %v876_v26, %v146_v20  ;;  %v222_v51 = vadd.f32 %v219_v58, %v214_v23  ;;  %v355_v25 = vmul.f32 %v965_v61, %v1001_v39 }
  0x47   :  { %v314_v0 = vadd.f32 1.0, %v623_v40  ;;  %634 = vpow2.f32 %v548_v24  ;;  %v290_v55 = vadd.f32 %v287_v33, %v282_v36  ;;  %v363_v57 = vmul.f32 %v977_v11, %v1014_v48 }
  0x48   :  { %v559_v52 = vmul.f32 -1.442695, %v151_v50  ;;  %v227_v62 = vadd.f32 %v910_v38, %v222_v51  ;;  %v358_v63 = vadd.f32 %v355_v25, %v350_v18  ;;  %v371_v7 = vmul.f32 %v980_v12, %v1016_v49  ;;  %v1087_v50 = vld [vmem:[#allocation6 + $0x40] sm:$0xff] }
  0x49   :  { %v1072_v3 = vpop.eup %624  ;;  %636 = vrcp.f32 %v314_v0  ;;  %v298_v58 = vadd.f32 %v295_v35, %v290_v55  ;;  %v426_v8 = vmul.f32 %v993_v31, %v819_v6  ;;  %v431_v19 = vmul.f32 %v996_v32, %v1001_v39  ;;  %v1085_v6 = vld [vmem:[#allocation6 + $0x28] sm:$0xff]  ;;  %v1089_v39 = vld [vmem:[#allocation6 + $0x58] sm:$0xff] }
  0x4a   :  { %v627_v20 = vpop.eup %626  ;;  %v106_v23 = vmul.f32 %v1072_v3, %v839_v14  ;;  %638 = vpow2.f32 %v559_v52  ;;  %v570_v33 = vmul.f32 -1.442695, %v227_v62  ;;  %v366_v24 = vadd.f32 %v363_v57, %v358_v63 }
  0x4b   :  { %v390_v36 = vadd.f32 1.0, %v627_v20  ;;  %v303_v18 = vadd.f32 %v950_v54, %v298_v58  ;;  %v434_v40 = vadd.f32 %v431_v19, %v426_v8  ;;  %v439_v35 = vmul.f32 %v1006_v41, %v1014_v48 }
  0x4c   :  { %v1091_v51 = vpop.eup %628  ;;  %640 = vpow2.f32 %v570_v33  ;;  %v374_v25 = vadd.f32 %v371_v7, %v366_v24  ;;  %v447_v0 = vmul.f32 %v1009_v43, %v1016_v49  ;;  %v44_v55 = vmul.f32 %v811_v4, %v1078_v2 }
  0x4d   :  { %v173_v57 = vmul.f32 %v1091_v51, %v883_v28  ;;  %642 = vrcp.f32 %v390_v36  ;;  %v581_v48 = vmul.f32 -1.442695, %v303_v18  ;;  %v442_v52 = vadd.f32 %v439_v35, %v434_v40 }
  0x4e   :  { %v379_v62 = vadd.f32 %v983_v15, %v374_v25  ;;  %v53_v63 = vmul.f32 %v813_v5, %v1085_v6  ;;  %v65_v7 = vmul.f32 %v825_v9, %v1087_v50  ;;  %v77_v49 = vmul.f32 %v827_v10, %v1089_v39 }
  0x4f   :  { %v1106_v58 = vpop.eup %630  ;;  %v176_v4 = vadd.f32 %v173_v57, %v106_v23  ;;  %644 = vpow2.f32 %v581_v48  ;;  %v450_v8 = vadd.f32 %v447_v0, %v442_v52  ;;  %v123_v19 = vmul.f32 %v845_v16, %v1078_v2 }
  0x50   :  { %v633_v20 = vpop.eup %632  ;;  %v249_v33 = vmul.f32 %v1106_v58, %v920_v42  ;;  %v592_v24 = vmul.f32 -1.442695, %v379_v62  ;;  %v56_v5 = vadd.f32 %v53_v63, %v44_v55  ;;  %v128_v9 = vmul.f32 %v847_v17, %v1085_v6 }
  0x51   :  { %v635_v36 = vpop.eup %634  ;;  %v466_v18 = vadd.f32 1.0, %v633_v20  ;;  %v455_v10 = vadd.f32 %v1012_v47, %v450_v8  ;;  %v136_v23 = vmul.f32 %v862_v21, %v1087_v50  ;;  %v144_v40 = vmul.f32 %v865_v22, %v1089_v39 }
  0x52   :  { %v252_v16 = vadd.f32 %v249_v33, %v176_v4  ;;  %v96_v35 = vadd.f32 1.0, %v635_v36  ;;  %646 = vpow2.f32 %v592_v24  ;;  %v68_v25 = vadd.f32 %v65_v7, %v56_v5 }
  0x53   :  { %v1119_v0 = vpop.eup %636  ;;  %648 = vrcp.f32 %v466_v18  ;;  %v603_v55 = vmul.f32 -1.442695, %v455_v10  ;;  %v131_v57 = vadd.f32 %v128_v9, %v123_v19  ;;  %v199_v17 = vmul.f32 %v886_v29, %v1078_v2 }
  0x54   :  { %v639_v48 = vpop.eup %638  ;;  %v325_v52 = vmul.f32 %v1119_v0, %v959_v59  ;;  %650 = vrcp.f32 %v96_v35  ;;  %v80_v21 = vadd.f32 %v77_v49, %v68_v25  ;;  %v204_v22 = vmul.f32 %v889_v30, %v1085_v6 }
  0x55   :  { %v163_v62 = vadd.f32 1.0, %v639_v48  ;;  %652 = vpow2.f32 %v603_v55  ;;  %v139_v63 = vadd.f32 %v136_v23, %v131_v57  ;;  %v212_v7 = vmul.f32 %v900_v34, %v1087_v50 }
  0x56   :  { %v641_v4 = vpop.eup %640  ;;  %v328_v8 = vadd.f32 %v325_v52, %v252_v16  ;;  %v85_v19 = vadd.f32 %v837_v13, %v80_v21  ;;  %v207_v29 = vadd.f32 %v204_v22, %v199_v17  ;;  %v220_v20 = vmul.f32 %v907_v37, %v1089_v39 }
  0x57   :  { %v1132_v33 = vpop.eup %642  ;;  %654 = vrcp.f32 %v163_v62  ;;  %v239_v49 = vadd.f32 1.0, %v641_v4  ;;  %v147_v24 = vadd.f32 %v144_v40, %v139_v63  ;;  %v275_v30 = vmul.f32 %v925_v44, %v1078_v2 }
  0x58   :  { %v401_v5 = vmul.f32 %v1132_v33, %v990_v27  ;;  %v549_v34 = vmul.f32 -1.442695, %v85_v19  ;;  %v215_v9 = vadd.f32 %v212_v7, %v207_v29  ;;  %v280_v13 = vmul.f32 %v928_v45, %v1085_v6 }
  0x59   :  { %v645_v36 = vpop.eup %644  ;;  %656 = vrcp.f32 %v239_v49  ;;  %v152_v37 = vadd.f32 %v876_v26, %v147_v24  ;;  %v288_v18 = vmul.f32 %v931_v46, %v1087_v50  ;;  %v296_v10 = vmul.f32 %v947_v53, %v1089_v39 }
  0x5a   :  { %v404_v23 = vadd.f32 %v401_v5, %v328_v8  ;;  %v315_v44 = vadd.f32 1.0, %v645_v36  ;;  %658 = vpow2.f32 %v549_v34  ;;  %v223_v40 = vadd.f32 %v220_v20, %v215_v9 }
  0x5b   :  { %v560_v16 = vmul.f32 -1.442695, %v152_v37  ;;  %v283_v35 = vadd.f32 %v280_v13, %v275_v30  ;;  %v351_v45 = vmul.f32 %v962_v60, %v1078_v2  ;;  %v356_v26 = vmul.f32 %v965_v61, %v1085_v6 }
  0x5c   :  { %v647_v25 = vpop.eup %646  ;;  %660 = vrcp.f32 %v315_v44  ;;  %v228_v46 = vadd.f32 %v910_v38, %v223_v40  ;;  %v364_v53 = vmul.f32 %v977_v11, %v1087_v50  ;;  %v372_v55 = vmul.f32 %v980_v12, %v1089_v39 }
  0x5d   :  { %v1160_v57 = vpop.eup %648  ;;  %v391_v60 = vadd.f32 1.0, %v647_v25  ;;  %662 = vpow2.f32 %v560_v16  ;;  %v291_v17 = vadd.f32 %v288_v18, %v283_v35  ;;  %v359_v61 = vadd.f32 %v356_v26, %v351_v45 }
  0x5e   :  { %v1162_v48 = vpop.eup %650  ;;  %v477_v38 = vmul.f32 %v1160_v57, %v1023_v1  ;;  %v571_v52 = vmul.f32 -1.442695, %v228_v46  ;;  %v427_v11 = vmul.f32 %v993_v31, %v1078_v2  ;;  %v432_v12 = vmul.f32 %v996_v32, %v1085_v6 }
  0x5f   :  { %v653_v21 = vpop.eup %652  ;;  %v107_v22 = vmul.f32 %v1162_v48, %v839_v14  ;;  %664 = vrcp.f32 %v391_v60  ;;  %v299_v62 = vadd.f32 %v296_v10, %v291_v17  ;;  %v367_v63 = vadd.f32 %v364_v53, %v359_v61 }
  0x60   :  { %v480_v7 = vadd.f32 %v477_v38, %v404_v23  ;;  %v467_v4 = vadd.f32 1.0, %v653_v21  ;;  %666 = vpow2.f32 %v571_v52  ;;  %v435_v8 = vadd.f32 %v432_v12, %v427_v11 }
  0x61   :  { %v1176_v31 = vpop.eup %654  ;;  %v304_v32 = vadd.f32 %v950_v54, %v299_v62  ;;  %v375_v2 = vadd.f32 %v372_v55, %v367_v63  ;;  %v440_v6 = vmul.f32 %v1006_v41, %v1087_v50  ;;  %v448_v19 = vmul.f32 %v1009_v43, %v1089_v39 }
  0x62   :  { %v501_v29 = vadd.f32 %v1026_v56, %v480_v7  ;;  %v174_v20 = vmul.f32 %v1176_v31, %v883_v28  ;;  %668 = vrcp.f32 %v467_v4  ;;  %v1189_v49 = vstv %s1145_s1 }
  0x63   :  { %v1191_v54 = vpop.eup %656  ;;  %v582_v24 = vmul.f32 -1.442695, %v304_v32  ;;  %v380_v41 = vadd.f32 %v983_v15, %v375_v2  ;;  %v443_v50 = vadd.f32 %v440_v6, %v435_v8  ;;  %v111_v43 = vmul.f32 %v1072_v3, %v1189_v49 }
  0x64   :  { %v659_v39 = vpop.eup %658  ;;  %504 = vst [vmem:[#allocation7] sm:$0xff] %v501_v29  ;;  %v177_v30 = vadd.f32 %v174_v20, %v107_v22  ;;  %v250_v5 = vmul.f32 %v1191_v54, %v920_v42  ;;  %v1201_v34 = vstv %s1156_s13  ;;  %v1204_v9 = vstv %s1158_s14 }
  0x65   :  { %v97_v13 = vadd.f32 1.0, %v659_v39  ;;  %670 = vpow2.f32 %v582_v24  ;;  %v593_v15 = vmul.f32 -1.442695, %v380_v41  ;;  %v451_v36 = vadd.f32 %v448_v19, %v443_v50 }
  0x66   :  { %v1206_v37 = vpop.eup %660  ;;  %v253_v18 = vadd.f32 %v250_v5, %v177_v30  ;;  %v181_v10 = vmul.f32 %v1091_v51, %v1201_v34  ;;  %v257_v23 = vmul.f32 %v1106_v58, %v1204_v9  ;;  %v1213_v44 = vstv %s1170_s15 }
  0x67   :  { %v663_v40 = vpop.eup %662  ;;  %v326_v16 = vmul.f32 %v1206_v37, %v959_v59  ;;  %672 = vrcp.f32 %v97_v13  ;;  %v456_v35 = vadd.f32 %v1012_v47, %v451_v36  ;;  %v333_v45 = vmul.f32 %v1119_v0, %v1213_v44 }
  0x68   :  { %v164_v26 = vadd.f32 1.0, %v663_v40  ;;  %674 = vpow2.f32 %v593_v15  ;;  %v184_v25 = vadd.f32 %v181_v10, %v111_v43  ;;  %v1227_v46 = vstv %s1174_s16 }
  0x69   :  { %v1229_v53 = vpop.eup %664  ;;  %v329_v55 = vadd.f32 %v326_v16, %v253_v18  ;;  %v604_v60 = vmul.f32 -1.442695, %v456_v35  ;;  %v409_v47 = vmul.f32 %v1132_v33, %v1227_v46  ;;  %v1234_v17 = vstv %s1183_s17 }
  0x6a   :  { %v667_v61 = vpop.eup %666  ;;  %v402_v38 = vmul.f32 %v1229_v53, %v990_v27  ;;  %676 = vrcp.f32 %v164_v26  ;;  %v260_v52 = vadd.f32 %v257_v23, %v184_v25  ;;  %v485_v11 = vmul.f32 %v1160_v57, %v1234_v17 }
  0x6b   :  { %v240_v12 = vadd.f32 1.0, %v667_v61  ;;  %678 = vpow2.f32 %v604_v60  ;;  %v1245_v21 = vstv %s1196_s18  ;;  %v112_v22 = vmul.f32 %v1162_v48, %v1189_v49 }
  0x6c   :  { %v1249_v62 = vpop.eup %668  ;;  %v405_v63 = vadd.f32 %v402_v38, %v329_v55  ;;  %v336_v7 = vadd.f32 %v333_v45, %v260_v52  ;;  %v182_v4 = vmul.f32 %v1176_v31, %v1201_v34  ;;  %v258_v8 = vmul.f32 %v1191_v54, %v1204_v9 }
  0x6d   :  { %v478_v32 = vmul.f32 %v1249_v62, %v1023_v1  ;;  %680 = vrcp.f32 %v240_v12  ;;  %v334_v2 = vmul.f32 %v1206_v37, %v1213_v44  ;;  %v410_v6 = vmul.f32 %v1229_v53, %v1227_v46 }
  0x6e   :  { %v412_v19 = vadd.f32 %v409_v47, %v336_v7  ;;  %v185_v29 = vadd.f32 %v182_v4, %v112_v22  ;;  %v486_v20 = vmul.f32 %v1249_v62, %v1234_v17  ;;  %v115_v24 = vstv %s1215_s19 }
  0x6f   :  { %v671_v41 = vpop.eup %670  ;;  %v481_v50 = vadd.f32 %v478_v32, %v405_v63  ;;  %v116_v43 = vmul.f32 %v1072_v3, %v115_v24  ;;  %v188_v39 = vstv %s1222_s20  ;;  %v264_v30 = vstv %s1224_s21 }
  0x70   :  { %v316_v5 = vadd.f32 1.0, %v671_v41  ;;  %v488_v13 = vadd.f32 %v485_v11, %v412_v19  ;;  %v261_v15 = vadd.f32 %v258_v8, %v185_v29  ;;  %v189_v36 = vmul.f32 %v1091_v51, %v188_v39 }
  0x71   :  { %v673_v18 = vpop.eup %672  ;;  %v502_v10 = vadd.f32 %v1026_v56, %v481_v50  ;;  %v265_v23 = vmul.f32 %v1106_v58, %v264_v30  ;;  %v340_v40 = vstv %s1236_s22  ;;  %v1274_v16 = vstv %s1238_s23 }
  0x72   :  { %v675_v35 = vpop.eup %674  ;;  %v108_v45 = vmul.f32 %v673_v18, %v839_v14  ;;  %682 = vrcp.f32 %v316_v5  ;;  %v509_v3 = vadd.f32 %v1245_v21, %v488_v13  ;;  %v337_v26 = vadd.f32 %v334_v2, %v261_v15 }
  0x73   :  { %505 = vst [vmem:[#allocation7 + $0x8] sm:$0xff] %v502_v10  ;;  %v392_v51 = vadd.f32 1.0, %v675_v35  ;;  %v113_v25 = vmul.f32 %v673_v18, %v1189_v49  ;;  %v192_v55 = vadd.f32 %v189_v36, %v116_v43  ;;  %v341_v58 = vmul.f32 %v1119_v0, %v340_v40 }
  0x74   :  { %v677_v60 = vpop.eup %676  ;;  %513 = vst [vmem:[#allocation7 + $0x18] sm:$0xff] %v509_v3  ;;  %v413_v47 = vadd.f32 %v410_v6, %v337_v26  ;;  %v417_v61 = vmul.f32 %v1132_v33, %v1274_v16  ;;  %v492_v14 = vstv %s1255_s24  ;;  %v117_v0 = vmul.f32 %v1162_v48, %v115_v24 }
  0x75   :  { %v679_v38 = vpop.eup %678  ;;  %v175_v52 = vmul.f32 %v677_v60, %v883_v28  ;;  %684 = vrcp.f32 %v392_v51  ;;  %v183_v11 = vmul.f32 %v677_v60, %v1201_v34  ;;  %v268_v12 = vadd.f32 %v265_v23, %v192_v55 }
  0x76   :  { %v468_v22 = vadd.f32 1.0, %v679_v38  ;;  %v489_v63 = vadd.f32 %v486_v20, %v413_v47  ;;  %v493_v49 = vmul.f32 %v1160_v57, %v492_v14  ;;  %v190_v33 = vmul.f32 %v1176_v31, %v188_v39 }
  0x77   :  { %v681_v7 = vpop.eup %680  ;;  %v178_v4 = vadd.f32 %v175_v52, %v108_v45  ;;  %v186_v8 = vadd.f32 %v183_v11, %v113_v25  ;;  %v344_v32 = vadd.f32 %v341_v58, %v268_v12  ;;  %v266_v57 = vmul.f32 %v1191_v54, %v264_v30 }
  0x78   :  { %v251_v2 = vmul.f32 %v681_v7, %v920_v42  ;;  %686 = vrcp.f32 %v468_v22  ;;  %v510_v28 = vadd.f32 %v1245_v21, %v489_v63  ;;  %v259_v34 = vmul.f32 %v681_v7, %v1204_v9 }
  0x79   :  { %v420_v6 = vadd.f32 %v417_v61, %v344_v32  ;;  %v193_v19 = vadd.f32 %v190_v33, %v117_v0  ;;  %v342_v48 = vmul.f32 %v1206_v37, %v340_v40  ;;  %v517_v41 = vstv %s1278_s25 }
  0x7a   :  { %v254_v29 = vadd.f32 %v251_v2, %v178_v4  ;;  %514 = vst [vmem:[#allocation7 + $0x20] sm:$0xff] %v510_v28  ;;  %v262_v20 = vadd.f32 %v259_v34, %v186_v8  ;;  %v418_v31 = vmul.f32 %v1229_v53, %v1274_v16  ;;  %v118_v43 = vmul.f32 %v673_v18, %v115_v24 }
  0x7b   :  { %v496_v50 = vadd.f32 %v493_v49, %v420_v6  ;;  %v269_v42 = vadd.f32 %v266_v57, %v193_v19  ;;  %v191_v5 = vmul.f32 %v677_v60, %v188_v39  ;;  %v494_v9 = vmul.f32 %v1249_v62, %v492_v14 }
  0x7c   :  { %v683_v13 = vpop.eup %682  ;;  %v267_v15 = vmul.f32 %v681_v7, %v264_v30 }
  0x7d   :  { %v327_v36 = vmul.f32 %v683_v13, %v959_v59  ;;  %v335_v54 = vmul.f32 %v683_v13, %v1213_v44  ;;  %v518_v37 = vadd.f32 %v517_v41, %v496_v50  ;;  %v345_v10 = vadd.f32 %v342_v48, %v269_v42 }
  0x7e   :  { %v194_v23 = vadd.f32 %v191_v5, %v118_v43  ;;  %v343_v35 = vmul.f32 %v683_v13, %v340_v40 }
  0x7f   :  { %v685_v45 = vpop.eup %684  ;;  %v330_v3 = vadd.f32 %v327_v36, %v254_v29  ;;  %v338_v26 = vadd.f32 %v335_v54, %v262_v20  ;;  %522 = vst [vmem:[#allocation7 + $0x30] sm:$0xff] %v518_v37  ;;  %v421_v53 = vadd.f32 %v418_v31, %v345_v10 }
  0x80   :  { %v403_v24 = vmul.f32 %v685_v45, %v990_v27  ;;  %v411_v39 = vmul.f32 %v685_v45, %v1227_v46  ;;  %v270_v18 = vadd.f32 %v267_v15, %v194_v23  ;;  %v419_v62 = vmul.f32 %v685_v45, %v1274_v16 }
  0x81   :  { %v497_v30 = vadd.f32 %v494_v9, %v421_v53 }
  0x82   :  { %v687_v59 = vpop.eup %686  ;;  %v406_v51 = vadd.f32 %v403_v24, %v330_v3  ;;  %v414_v44 = vadd.f32 %v411_v39, %v338_v26  ;;  %v346_v25 = vadd.f32 %v343_v35, %v270_v18 }
  0x83   :  { %v479_v55 = vmul.f32 %v687_v59, %v1023_v1  ;;  %v487_v40 = vmul.f32 %v687_v59, %v1234_v17  ;;  %v519_v58 = vadd.f32 %v517_v41, %v497_v30  ;;  %v495_v60 = vmul.f32 %v687_v59, %v492_v14 }
  0x84   :  { %v422_v47 = vadd.f32 %v419_v62, %v346_v25 }
  0x85   :  { %v482_v61 = vadd.f32 %v479_v55, %v406_v51  ;;  %v490_v38 = vadd.f32 %v487_v40, %v414_v44  ;;  %523 = vst [vmem:[#allocation7 + $0x38] sm:$0xff] %v519_v58 }
  0x86   :  { %v498_v27 = vadd.f32 %v495_v60, %v422_v47 }
  0x87   :  { %v503_v46 = vadd.f32 %v1026_v56, %v482_v61  ;;  %v511_v16 = vadd.f32 %v1245_v21, %v490_v38 }
  0x88   :  { %v520_v52 = vadd.f32 %v517_v41, %v498_v27 }
  0x89   :  { %506 = vst [vmem:[#allocation7 + $0x10] sm:$0xff] %v503_v46  ;;  %515 = vst [vmem:[#allocation7 + $0x28] sm:$0xff] %v511_v16 }
  0x8a   :  { %524 = vst [vmem:[#allocation7 + $0x40] sm:$0xff] %v520_v52 }
  0x8b   :  { %731 = shalt.err (!%p728_p1)
}
  0x8c   :  { %s732_s4 = scalar_lea.hbm %s1325_s2, 1152 }
  0x8d   :  { %p733_p2 = scmp.ne.s32.totalorder %s1325_s2, %s732_s4  ;;  %p736_p3 = scmp.lt.u32.totalorder %s732_s4, %s1325_s2 }
  0x8f   :  { %p738_p4 = pnand %p736_p3, %p733_p2 }
  0x91   :  { %741 = shalt.err (!%p738_p4)
}
  0x92   :  { %536 = dma.vmem_to_hbm [thread:$0]  %s531_s27, 1152, %s1325_s2, [#allocation4], %s750_s0, %s750_s0, %s751_s29  }
  0x93   :  { %746 = dma.done.wait [#allocation4], 1152  }
  0x94   :  { %747 = vsyncadd [#allocation4], 4294966144 }
  0x95   :  { %540 = vsyncpa [#allocation3], 1 }
  0x96   :  { %541 = vsyncpa [#allocation4], 1 }
  0x97   :  { %542 = vsyncpa [#allocation5], 1 }

</bundles_post_ra>
